<compile_context>
chip_gen: v5e
topology: v5e:2x2
jax: 0.10.0
libtpu: 0.0.40
codegen_flags: <defaults>
</compile_context>

<pallas_src>
import functools

import jax
import jax.numpy as jnp
from jax.experimental import pallas as pl
from jax.experimental.pallas import tpu as pltpu


_LANES = 512                       # 128 anchors * 4 interleaved coords per row
_ANCHORS_PER_ROW = _LANES // 4     # 128
_MIN_PAD_ANCHORS = 8 * _ANCHORS_PER_ROW   # 1024 anchors -> 8 full (8,512) rows


def _round_up(x, m):
    return ((x + m - 1) // m) * m


def bbox_transform_kernel(boxes_ref, deltas_ref, out_ref, *, mean, std):
    # Blocks are (tile_rows, 512); every group of 4 lanes is one anchor's
    # [x1, y1, x2, y2] (and [dx, dy, dw, dh] for the deltas).
    b = boxes_ref[...]     # (tile_rows, 512)
    d = deltas_ref[...]    # (tile_rows, 512)
    lw = b.shape[-1]

    lane = jax.lax.broadcasted_iota(jnp.int32, (1, lw), 1)
    is_lo = (lane & 3) < 2          # lanes holding x1/y1 (-> outputs x1'/y1')
    is_x = (lane & 1) == 0          # x-like lanes vs y-like lanes

    # result[l] = v[l + 2]  (XLU lane rotation; wrap lanes are masked by is_lo)
    def shift_up(v):
        return pltpu.roll(v, lw - 2, 1)

    # result[l] = v[l - 2]  (wrap lanes are masked by ~is_lo)
    def shift_down(v):
        return pltpu.roll(v, 2, 1)

    # Broadcast each anchor's coords across its 4 lanes (fully lane-dense).
    lo = jnp.where(is_lo, b, shift_down(b))       # [x1, y1, x1, y1]
    hi = jnp.where(is_lo, shift_up(b), b)         # [x2, y2, x2, y2]
    dxy = jnp.where(is_lo, d, shift_down(d))      # [dx, dy, dx, dy]
    dwh = jnp.where(is_lo, shift_up(d), d)        # [dw, dh, dw, dh]

    wh = hi - lo                                  # [w,  h,  w,  h ]
    ctr = lo + 0.5 * wh                           # [cx, cy, cx, cy]

    # Fused whole-slab delta normalization with lane-pattern constants
    # (the (1, lw) constant rows broadcast over the sublane axis).
    dxy = dxy * jnp.where(is_x, std[0], std[1]) + jnp.where(is_x, mean[0], mean[1])
    dwh = dwh * jnp.where(is_x, std[2], std[3]) + jnp.where(is_x, mean[2], mean[3])

    pred_ctr = ctr + dxy * wh                     # [pcx, pcy, pcx, pcy]
    pred_wh = jnp.exp(dwh) * wh                   # [pw,  ph,  pw,  ph ]
    # Note: canonical Detectron clamps dw/dh before exp; the reference PyTorch
    # module does not, so we match the module exactly.

    half = jnp.where(is_lo, -0.5, 0.5)
    # Single lane-dense store of the whole output tile.
    out_ref[...] = (pred_ctr + half * pred_wh).astype(out_ref.dtype)


def bbox_transform(boxes, deltas, mean=None, std=None, max_anchors_per_tile=65536):
    """boxes, deltas: (B, N, 4) float32 -> pred_boxes: (B, N, 4) float32."""
    if mean is None:
        mean = (0.0, 0.0, 0.0, 0.0)
    if std is None:
        std = (0.1, 0.1, 0.2, 0.2)
    # Baked in as compile-time constants (distinct (mean, std) -> recompile).
    mean = tuple(float(m) for m in mean)
    std = tuple(float(s) for s in std)

    B, N, C = boxes.shape
    assert C == 4 and deltas.shape == boxes.shape

    # Flatten batch into the anchor axis so tiles can span batch boundaries and
    # we keep a single long "parallel" grid axis (megacore-friendly).
    A = B * N
    a_pad = _round_up(max(A, 1), _MIN_PAD_ANCHORS)   # 8-row minimum only

    boxes_f = boxes.reshape(A, 4)
    deltas_f = deltas.reshape(A, 4)
    if a_pad != A:
        pad = a_pad - A
        boxes_f = jnp.pad(boxes_f, ((0, pad), (0, 0)))
        deltas_f = jnp.pad(deltas_f, ((0, pad), (0, 0)))

    rows = a_pad // _ANCHORS_PER_ROW                 # multiple of 8
    boxes_r = boxes_f.reshape(rows, _LANES)          # free, contiguous reshape
    deltas_r = deltas_f.reshape(rows, _LANES)

    # ~1 MiB per buffer by default (tile_rows = 512); tile rows always a
    # multiple of 8.  Partial last block handled by the pipeline (cdiv grid).
    tile_anchors = min(_round_up(max_anchors_per_tile, _MIN_PAD_ANCHORS), a_pad)
    tile_rows = tile_anchors // _ANCHORS_PER_ROW
    grid_n = pl.cdiv(rows, tile_rows)

    kernel = functools.partial(bbox_transform_kernel, mean=mean, std=std)

    out_r = pl.pallas_call(
        kernel,
        out_shape=jax.ShapeDtypeStruct((rows, _LANES), boxes.dtype),
        grid_spec=pltpu.PrefetchScalarGridSpec(
            num_scalar_prefetch=0,
            grid=(grid_n,),
            in_specs=[
                pl.BlockSpec((tile_rows, _LANES), lambda i: (i, 0)),
                pl.BlockSpec((tile_rows, _LANES), lambda i: (i, 0)),
            ],
            out_specs=pl.BlockSpec((tile_rows, _LANES), lambda i: (i, 0)),
        ),
        compiler_params=pltpu.CompilerParams(
            dimension_semantics=("parallel",),
            vmem_limit_bytes=32 * 1024 * 1024,
        ),
        cost_estimate=pl.CostEstimate(
            flops=20 * a_pad * 4,
            transcendentals=4 * a_pad,
            bytes_accessed=3 * a_pad * 4 * 4,
        ),
    )(boxes_r, deltas_r)

    out = out_r.reshape(a_pad, 4)
    if a_pad != A:
        out = out[:A]
    return out.reshape(B, N, 4)


def _reference(boxes, deltas, mean, std):
    widths = boxes[:, :, 2] - boxes[:, :, 0]
    heights = boxes[:, :, 3] - boxes[:, :, 1]
    ctr_x = boxes[:, :, 0] + 0.5 * widths
    ctr_y = boxes[:, :, 1] + 0.5 * heights
    dx = deltas[:, :, 0] * std[0] + mean[0]
    dy = deltas[:, :, 1] * std[1] + mean[1]
    dw = deltas[:, :, 2] * std[2] + mean[2]
    dh = deltas[:, :, 3] * std[3] + mean[3]
    pred_ctr_x = ctr_x + dx * widths
    pred_ctr_y = ctr_y + dy * heights
    pred_w = jnp.exp(dw) * widths
    pred_h = jnp.exp(dh) * heights
    return jnp.stack(
        [
            pred_ctr_x - 0.5 * pred_w,
            pred_ctr_y - 0.5 * pred_h,
            pred_ctr_x + 0.5 * pred_w,
            pred_ctr_y + 0.5 * pred_h,
        ],
        axis=2,
    )


if __name__ == "__main__":
    key = jax.random.PRNGKey(0)
    k1, k2, k3, k4, k5, k6 = jax.random.split(key, 6)

    mean = (0.0, 0.0, 0.0, 0.0)
    std = (0.1, 0.1, 0.2, 0.2)

    # Small shapes consistent with the module: batch=2, 8 anchors, 4 coords.
    B, N = 2, 8
    xy1 = jax.random.uniform(k1, (B, N, 2), jnp.float32, 0.0, 32.0)
    wh = jax.random.uniform(k2, (B, N, 2), jnp.float32, 1.0, 16.0)
    boxes = jnp.concatenate([xy1, xy1 + wh], axis=2)          # (2, 8, 4)
    deltas = jax.random.normal(k3, (B, N, 4), jnp.float32)    # (2, 8, 4)

    pred = bbox_transform(boxes, deltas)
    jax.block_until_ready(pred)
    ref = _reference(boxes, deltas, mean, std)
    assert pred.shape == (B, N, 4)
    assert jnp.allclose(pred, ref, atol=1e-4, rtol=1e-4)

    # Second check: anchor count that is not a tile multiple exercises the
    # minimal padding + multi-step grid + partial-last-block path.
    B2, N2 = 2, 2500
    xy1b = jax.random.uniform(k4, (B2, N2, 2), jnp.float32, 0.0, 64.0)
    whb = jax.random.uniform(k5, (B2, N2, 2), jnp.float32, 1.0, 32.0)
    boxes2 = jnp.concatenate([xy1b, xy1b + whb], axis=2)
    deltas2 = jax.random.normal(k6, (B2, N2, 4), jnp.float32)

    pred2 = bbox_transform(boxes2, deltas2, max_anchors_per_tile=2048)
    jax.block_until_ready(pred2)
    ref2 = _reference(boxes2, deltas2, mean, std)
    assert pred2.shape == (B2, N2, 4)
    assert jnp.allclose(pred2, ref2, atol=1e-4, rtol=1e-4)

    print("KERNEL_OK")
</pallas_src>

<mosaic_0001>
module attributes {stable_mosaic.version = 11 : i64} {
  func.func @bbox_transform_kernel(%arg0: i32, %arg1: memref<8x512xf32, #tpu.memory_space<vmem>>, %arg2: memref<8x512xf32, #tpu.memory_space<vmem>>, %arg3: memref<8x512xf32, #tpu.memory_space<vmem>>) attributes {dimension_semantics = [#tpu.dimension_semantics<parallel>], iteration_bounds = array<i64: 1>, scalar_prefetch = 0 : i64, scratch_operands = 0 : i64, tpu.core_type = #tpu.core_type<tc>, window_params = [{transform_indices = @transform_0, window_bounds = array<i64: 8, 512>}, {transform_indices = @transform_1, window_bounds = array<i64: 8, 512>}, {transform_indices = @transform_2, window_bounds = array<i64: 8, 512>}]} {
    %c0 = arith.constant 0 : index
    %c0_0 = arith.constant 0 : index
    %0 = vector.load %arg1[%c0, %c0_0] : memref<8x512xf32, #tpu.memory_space<vmem>>, vector<8x512xf32>
    %c0_1 = arith.constant 0 : index
    %c0_2 = arith.constant 0 : index
    %1 = vector.load %arg2[%c0_1, %c0_2] : memref<8x512xf32, #tpu.memory_space<vmem>>, vector<8x512xf32>
    %2 = tpu.iota {dimensions = array<i32: 1>} : vector<1x512xi32>
    %c3_i32 = arith.constant 3 : i32
    %3 = vector.broadcast %c3_i32 : i32 to vector<1x512xi32>
    %4 = arith.andi %2, %3 : vector<1x512xi32>
    %c2_i32 = arith.constant 2 : i32
    %5 = vector.broadcast %c2_i32 : i32 to vector<1x512xi32>
    %6 = arith.cmpi slt, %4, %5 : vector<1x512xi32>
    %c1_i32 = arith.constant 1 : i32
    %7 = vector.broadcast %c1_i32 : i32 to vector<1x512xi32>
    %8 = arith.andi %2, %7 : vector<1x512xi32>
    %c0_i32 = arith.constant 0 : i32
    %9 = vector.broadcast %c0_i32 : i32 to vector<1x512xi32>
    %10 = arith.cmpi eq, %8, %9 : vector<1x512xi32>
    %c2_i32_3 = arith.constant 2 : i32
    %11 = tpu.dynamic_rotate %0 by %c2_i32_3 dim 1 : vector<8x512xf32>, i32 -> vector<8x512xf32>
    %12 = vector.shape_cast %6 : vector<1x512xi1> to vector<1x512xi1>
    %13 = vector.broadcast %12 : vector<1x512xi1> to vector<8x512xi1>
    %14 = arith.select %13, %0, %11 : vector<8x512xi1>, vector<8x512xf32>
    %c510_i32 = arith.constant 510 : i32
    %15 = tpu.dynamic_rotate %0 by %c510_i32 dim 1 : vector<8x512xf32>, i32 -> vector<8x512xf32>
    %16 = vector.shape_cast %6 : vector<1x512xi1> to vector<1x512xi1>
    %17 = vector.broadcast %16 : vector<1x512xi1> to vector<8x512xi1>
    %18 = arith.select %17, %15, %0 : vector<8x512xi1>, vector<8x512xf32>
    %c2_i32_4 = arith.constant 2 : i32
    %19 = tpu.dynamic_rotate %1 by %c2_i32_4 dim 1 : vector<8x512xf32>, i32 -> vector<8x512xf32>
    %20 = vector.shape_cast %6 : vector<1x512xi1> to vector<1x512xi1>
    %21 = vector.broadcast %20 : vector<1x512xi1> to vector<8x512xi1>
    %22 = arith.select %21, %1, %19 : vector<8x512xi1>, vector<8x512xf32>
    %c510_i32_5 = arith.constant 510 : i32
    %23 = tpu.dynamic_rotate %1 by %c510_i32_5 dim 1 : vector<8x512xf32>, i32 -> vector<8x512xf32>
    %24 = vector.shape_cast %6 : vector<1x512xi1> to vector<1x512xi1>
    %25 = vector.broadcast %24 : vector<1x512xi1> to vector<8x512xi1>
    %26 = arith.select %25, %23, %1 : vector<8x512xi1>, vector<8x512xf32>
    %27 = arith.subf %18, %14 : vector<8x512xf32>
    %cst = arith.constant 5.000000e-01 : f32
    %28 = vector.broadcast %cst : f32 to vector<8x512xf32>
    %29 = arith.mulf %28, %27 : vector<8x512xf32>
    %30 = arith.addf %14, %29 : vector<8x512xf32>
    %cst_6 = arith.constant 1.000000e-01 : f32
    %cst_7 = arith.constant 1.000000e-01 : f32
    %31 = vector.broadcast %cst_6 : f32 to vector<1x512xf32>
    %32 = vector.broadcast %cst_7 : f32 to vector<1x512xf32>
    %33 = arith.select %10, %31, %32 : vector<1x512xi1>, vector<1x512xf32>
    %34 = vector.broadcast %33 : vector<1x512xf32> to vector<8x512xf32>
    %35 = arith.mulf %22, %34 : vector<8x512xf32>
    %cst_8 = arith.constant 0.000000e+00 : f32
    %cst_9 = arith.constant 0.000000e+00 : f32
    %36 = vector.broadcast %cst_8 : f32 to vector<1x512xf32>
    %37 = vector.broadcast %cst_9 : f32 to vector<1x512xf32>
    %38 = arith.select %10, %36, %37 : vector<1x512xi1>, vector<1x512xf32>
    %39 = vector.broadcast %38 : vector<1x512xf32> to vector<8x512xf32>
    %40 = arith.addf %35, %39 : vector<8x512xf32>
    %cst_10 = arith.constant 2.000000e-01 : f32
    %cst_11 = arith.constant 2.000000e-01 : f32
    %41 = vector.broadcast %cst_10 : f32 to vector<1x512xf32>
    %42 = vector.broadcast %cst_11 : f32 to vector<1x512xf32>
    %43 = arith.select %10, %41, %42 : vector<1x512xi1>, vector<1x512xf32>
    %44 = vector.broadcast %43 : vector<1x512xf32> to vector<8x512xf32>
    %45 = arith.mulf %26, %44 : vector<8x512xf32>
    %cst_12 = arith.constant 0.000000e+00 : f32
    %cst_13 = arith.constant 0.000000e+00 : f32
    %46 = vector.broadcast %cst_12 : f32 to vector<1x512xf32>
    %47 = vector.broadcast %cst_13 : f32 to vector<1x512xf32>
    %48 = arith.select %10, %46, %47 : vector<1x512xi1>, vector<1x512xf32>
    %49 = vector.broadcast %48 : vector<1x512xf32> to vector<8x512xf32>
    %50 = arith.addf %45, %49 : vector<8x512xf32>
    %51 = arith.mulf %40, %27 : vector<8x512xf32>
    %52 = arith.addf %30, %51 : vector<8x512xf32>
    %53 = math.exp %50 : vector<8x512xf32>
    %54 = arith.mulf %53, %27 : vector<8x512xf32>
    %cst_14 = arith.constant -5.000000e-01 : f32
    %cst_15 = arith.constant 5.000000e-01 : f32
    %55 = vector.broadcast %cst_14 : f32 to vector<1x512xf32>
    %56 = vector.broadcast %cst_15 : f32 to vector<1x512xf32>
    %57 = arith.select %6, %55, %56 : vector<1x512xi1>, vector<1x512xf32>
    %58 = vector.broadcast %57 : vector<1x512xf32> to vector<8x512xf32>
    %59 = arith.mulf %58, %54 : vector<8x512xf32>
    %60 = arith.addf %52, %59 : vector<8x512xf32>
    %c0_16 = arith.constant 0 : index
    %c0_17 = arith.constant 0 : index
    %61 = vector.load %arg3[%c0_16, %c0_17] : memref<8x512xf32, #tpu.memory_space<vmem>>, vector<8x512xf32>
    tpu.vector_store %arg3[%c0_16, %c0_17], %60 {strides = array<i32>} : memref<8x512xf32, #tpu.memory_space<vmem>>, vector<8x512xf32>,
    return
  }
  func.func @transform_0(%arg0: i32) -> (i32, i32) {
    %c0_i32 = arith.constant 0 : i32
    %c0_i32_0 = arith.constant 0 : i32
    return %arg0, %c0_i32 : i32, i32
  }
  func.func @transform_1(%arg0: i32) -> (i32, i32) {
    %c0_i32 = arith.constant 0 : i32
    %c0_i32_0 = arith.constant 0 : i32
    return %arg0, %c0_i32 : i32, i32
  }
  func.func @transform_2(%arg0: i32) -> (i32, i32) {
    %c0_i32 = arith.constant 0 : i32
    %c0_i32_0 = arith.constant 0 : i32
    return %arg0, %c0_i32 : i32, i32
  }
}

</mosaic_0001>

<bundles_post_ra>
// kernel: tpu_custom_call.1
= control target key start
LH: loop header
LB: loop body
LE: loop exit
PB: predicated region body
PF: predicated region fallthrough
CT: control target
= control target key end

     0   :  { %7 = vsyncpa [#allocation3], 0  ;;  %s483_s0 = inlined_call_operand.hbm [shape: f32[8,512], index: 0, kind: input, shape index: {}]   ;;  %s484_s1 = inlined_call_operand.hbm [shape: f32[8,512], index: 1, kind: input, shape index: {}]   ;;  %s485_s2 = inlined_call_operand.hbm [shape: f32[8,512], index: 2, kind: output, shape index: {}]  }
   0x1   :  { %8 = vsyncpa [#allocation6], 0 }
   0x2   :  { %9 = vsyncpa [#allocation4], 0  ;;  %s15_s11 = sshll.u32 %s483_s0, 4  ;;  %s309_s12 = smov [#allocation2]   ;;  %s16_s11 = int_to_ptr.hbm [resolvable:$true] %s15_s11 }
   0x3   :  { %s17_s13 = sshll.u32 %s309_s12, 4  ;;  %s26_s16 = sshll.u32 %s484_s1, 4  ;;  %s18_s13 = int_to_ptr.vmem [resolvable:$true] %s17_s13  ;;  %s27_s16 = int_to_ptr.hbm [resolvable:$true] %s26_s16 }
   0x4   :  { %20 = dma.hbm_to_vmem [thread:$0]  %s16_s11, 512, %s18_s13, [#allocation3]  }
   0x5   :  { %s310_s17 = smov [#allocation5]  }
   0x6   :  { %s28_s18 = sshll.u32 %s310_s17, 4  ;;  %s29_s18 = int_to_ptr.vmem [resolvable:$true] %s28_s18 }
   0x7   :  { %31 = dma.hbm_to_vmem [thread:$0]  %s27_s16, 512, %s29_s18, [#allocation6]  }
   0x8   :  { %303 = dma.done.wait [#allocation3], 512  }
   0x9   :  { %304 = vsyncadd [#allocation3], 4294966784 }
   0xa   :  { %305 = dma.done.wait [#allocation6], 512  }
   0xb   :  { %306 = vsyncadd [#allocation6], 4294966784  ;;  %v336_v0 = vld [vmem:[#allocation5 + $0x10] sm:$0xff]  ;;  %v338_v1 = vld [vmem:[#allocation5] sm:$0xff]  ;;  %s311_s0 = smov 126   ;;  %s312_s1 = smov 2   ;;  %v48_v9 = vlaneseq }
   0xc   :  { %123 = vrot.lane.b32.xlu1 %v336_v0, %s311_s0  ;;  %119 = vrot.lane.b32.xlu0 %v338_v1, %s311_s0  ;;  %v342_v2 = vld [vmem:[#allocation2] sm:$0xff]  ;;  %v345_v3 = vld [vmem:[#allocation5 + $0x18] sm:$0xff]  ;;  %v347_v4 = vld [vmem:[#allocation5 + $0x8] sm:$0xff]  ;;  %v313_v63 = vmov 0.5   ;;  %s314_s19 = smov [#allocation7]   ;;  %s206_s23 = sshll.u32 %s485_s2, 4  ;;  %s207_s23 = int_to_ptr.hbm [resolvable:$true] %s206_s23 }
   0xd   :  { %61 = vrot.lane.b32.xlu2 %v342_v2, %s312_s1  ;;  %v349_v5 = vld [vmem:[#allocation2 + $0x8] sm:$0xff]  ;;  %v354_v6 = vld [vmem:[#allocation2 + $0x18] sm:$0xff]  ;;  %v356_v7 = vld [vmem:[#allocation2 + $0x10] sm:$0xff]  ;;  %v368_v12 = vand.u32 127, %v48_v9  ;;  %s204_s20 = sshll.u32 %s314_s19, 4  ;;  %s205_s20 = int_to_ptr.vmem [resolvable:$true] %s204_s20 }
   0xf   :  { %v51_v14 = vadd.s32 256, %v368_v12  ;;  %v50_v15 = vadd.s32 128, %v368_v12  ;;  %vm94_vm0 = vcmp.lt.s32.totalorder %v368_v12, 126  ;;  %v52_v20 = vadd.s32 384, %v368_v12 }
  0x10   :  { %v53_v31 = vand.u32 3, %v368_v12  ;;  %vm69_vm4 = vcmp.lt.s32.totalorder %v368_v12, 2 }
  0x11   :  { %v55_v18 = vand.u32 3, %v51_v14  ;;  %v54_v19 = vand.u32 3, %v50_v15  ;;  %v56_v26 = vand.u32 3, %v52_v20 }
  0x12   :  { %vm400_vm5 = vcmp.lt.s32.totalorder %v53_v31, 2 }
  0x13   :  { %vm374_vm1 = vcmp.lt.s32.totalorder %v55_v18, 2  ;;  %vm380_vm2 = vcmp.lt.s32.totalorder %v54_v19, 2  ;;  %vm393_vm3 = vcmp.lt.s32.totalorder %v56_v26, 2  ;;  %v183_v12 = vsel %vm400_vm5, -0.5, %v313_v63 }
  0x14   :  { %125 = vrot.lane.b32.xlu1 %v345_v3, %s311_s0  ;;  %121 = vrot.lane.b32.xlu0 %v347_v4, %s311_s0 }
  0x15   :  { %63 = vrot.lane.b32.xlu2 %v349_v5, %s312_s1 }
  0x1c   :  { %67 = vrot.lane.b32.xlu1 %v354_v6, %s312_s1  ;;  %65 = vrot.lane.b32.xlu0 %v356_v7, %s312_s1 }
  0x1d   :  { %86 = vrot.lane.b32.xlu2 %v342_v2, %s311_s0 }
  0x24   :  { %90 = vrot.lane.b32.xlu1 %v356_v7, %s311_s0  ;;  %88 = vrot.lane.b32.xlu0 %v349_v5, %s311_s0 }
  0x25   :  { %92 = vrot.lane.b32.xlu2 %v354_v6, %s311_s0 }
  0x2c   :  { %105 = vrot.lane.b32.xlu1 %v347_v4, %s312_s1  ;;  %103 = vrot.lane.b32.xlu0 %v338_v1, %s312_s1 }
  0x2d   :  { %107 = vrot.lane.b32.xlu2 %v336_v0, %s312_s1 }
  0x34   :  { %109 = vrot.lane.b32.xlu0 %v345_v3, %s312_s1 }
  0x67   :  { %v62_v8 = vpop.permute.xlu2 %61 }
  0x6f   :  { %v64_v13 = vpop.permute.xlu2 %63 }
  0x70   :  { %v72_v41 = vsel %vm69_vm4, %v62_v8, %v64_v13 }
  0x71   :  { %v83_v52 = vsel %vm380_vm2, %v349_v5, %v72_v41 }
  0x77   :  { %v87_v21 = vpop.permute.xlu2 %86 }
  0x7e   :  { %v124_v10 = vpop.permute.xlu1 %123  ;;  %v120_v11 = vpop.permute.xlu0 %119 }
  0x7f   :  { %v93_v38 = vpop.permute.xlu2 %92 }
  0x80   :  { %v98_v55 = vsel %vm94_vm0, %v93_v38, %v87_v21 }
  0x86   :  { %v126_v16 = vpop.permute.xlu1 %125  ;;  %v122_v17 = vpop.permute.xlu0 %121 }
  0x87   :  { %v127_v23 = vsel %vm94_vm0, %v124_v10, %v126_v16  ;;  %v128_v25 = vsel %vm94_vm0, %v122_v17, %v124_v10  ;;  %v130_v34 = vsel %vm94_vm0, %v126_v16, %v120_v11  ;;  %v129_v37 = vsel %vm94_vm0, %v120_v11, %v122_v17  ;;  %v108_v61 = vpop.permute.xlu2 %107 }
  0x88   :  { %v133_v27 = vsel %vm374_vm1, %v127_v23, %v336_v0  ;;  %v132_v30 = vsel %vm380_vm2, %v128_v25, %v347_v4  ;;  %v134_v39 = vsel %vm393_vm3, %v130_v34, %v345_v3  ;;  %v131_v45 = vsel %vm400_vm5, %v129_v37, %v338_v1 }
  0x89   :  { %v157_v32 = vmul.f32 0.2, %v133_v27  ;;  %v156_v35 = vmul.f32 0.2, %v132_v30  ;;  %v158_v49 = vmul.f32 0.2, %v134_v39  ;;  %v102_v10 = vsel %vm393_vm3, %v98_v55, %v354_v6 }
  0x8a   :  { %v155_v53 = vmul.f32 0.2, %v131_v45 }
  0x8b   :  { %v175_v40 = vmul.f32 1.442695, %v157_v32  ;;  %v173_v42 = vmul.f32 1.442695, %v156_v35  ;;  %v177_v60 = vmul.f32 1.442695, %v158_v49 }
  0x8d   :  { %223 = vpow2.f32 %v175_v40 }
  0x8e   :  { %v68_v28 = vpop.permute.xlu1 %67  ;;  %v66_v29 = vpop.permute.xlu0 %65  ;;  %225 = vpow2.f32 %v173_v42 }
  0x8f   :  { %v71_v46 = vsel %vm69_vm4, %v64_v13, %v66_v29  ;;  %v70_v56 = vsel %vm69_vm4, %v66_v29, %v68_v28  ;;  %v73_v62 = vsel %vm69_vm4, %v68_v28, %v62_v8  ;;  %227 = vpow2.f32 %v177_v60 }
  0x90   :  { %v84_v54 = vsel %vm374_vm1, %v356_v7, %v71_v46  ;;  %v85_v9 = vsel %vm393_vm3, %v354_v6, %v70_v56  ;;  %v82_v6 = vsel %vm400_vm5, %v342_v2, %v73_v62  ;;  %v184_v29 = vsel %vm380_vm2, -0.5, %v313_v63 }
  0x91   :  { %v138_v28 = vsub.f32 %v102_v10, %v85_v9 }
  0x93   :  { %v224_v8 = vpop.eup %223 }
  0x94   :  { %v226_v19 = vpop.eup %225 }
  0x95   :  { %v228_v22 = vpop.eup %227 }
  0x96   :  { %v91_v43 = vpop.permute.xlu1 %90  ;;  %v89_v44 = vpop.permute.xlu0 %88 }
  0x97   :  { %v95_v47 = vsel %vm94_vm0, %v91_v43, %v93_v38  ;;  %v96_v48 = vsel %vm94_vm0, %v89_v44, %v91_v43  ;;  %v97_v58 = vsel %vm94_vm0, %v87_v21, %v89_v44 }
  0x98   :  { %v101_v50 = vsel %vm374_vm1, %v95_v47, %v356_v7  ;;  %v100_v51 = vsel %vm380_vm2, %v96_v48, %v349_v5  ;;  %v185_v5 = vsel %vm374_vm1, -0.5, %v313_v63  ;;  %v171_v7 = vmul.f32 1.442695, %v155_v53 }
  0x99   :  { %v137_v57 = vsub.f32 %v101_v50, %v84_v54  ;;  %v136_v59 = vsub.f32 %v100_v51, %v83_v52  ;;  %v99_v11 = vsel %vm400_vm5, %v97_v58, %v342_v2  ;;  %v182_v47 = vmul.f32 %v228_v22, %v138_v28 }
  0x9a   :  { %229 = vpow2.f32 %v171_v7  ;;  %v135_v30 = vsub.f32 %v99_v11, %v82_v6  ;;  %v186_v51 = vsel %vm393_vm3, -0.5, %v313_v63 }
  0x9b   :  { %v141_v15 = vmul.f32 0.5, %v137_v57  ;;  %v140_v16 = vmul.f32 0.5, %v136_v59  ;;  %v181_v23 = vmul.f32 %v224_v8, %v137_v57  ;;  %v180_v25 = vmul.f32 %v226_v19, %v136_v59 }
  0x9c   :  { %v139_v39 = vmul.f32 0.5, %v135_v30  ;;  %v190_v55 = vmul.f32 %v186_v51, %v182_v47 }
  0x9d   :  { %v144_v31 = vadd.f32 %v140_v16, %v83_v52  ;;  %v145_v32 = vadd.f32 %v141_v15, %v84_v54  ;;  %v189_v35 = vmul.f32 %v185_v5, %v181_v23 }
  0x9e   :  { %v106_v13 = vpop.permute.xlu1 %105  ;;  %v104_v14 = vpop.permute.xlu0 %103  ;;  %v143_v52 = vadd.f32 %v139_v39, %v82_v6 }
  0x9f   :  { %v113_v17 = vsel %vm69_vm4, %v104_v14, %v106_v13  ;;  %v112_v18 = vsel %vm69_vm4, %v106_v13, %v108_v61 }
  0xa0   :  { %v116_v20 = vsel %vm380_vm2, %v347_v4, %v113_v17  ;;  %v117_v21 = vsel %vm374_vm1, %v336_v0, %v112_v18  ;;  %v188_v4 = vmul.f32 %v184_v29, %v180_v25  ;;  %v142_v0 = vmul.f32 0.5, %v138_v28  ;;  %v230_v44 = vpop.eup %229 }
  0xa1   :  { %v148_v26 = vmul.f32 0.1, %v116_v20  ;;  %v149_v27 = vmul.f32 0.1, %v117_v21  ;;  %v179_v48 = vmul.f32 %v230_v44, %v135_v30 }
  0xa2   :  { %v146_v53 = vadd.f32 %v142_v0, %v85_v9 }
  0xa3   :  { %v164_v2 = vmul.f32 %v148_v26, %v136_v59  ;;  %v165_v34 = vmul.f32 %v149_v27, %v137_v57  ;;  %v187_v56 = vmul.f32 %v183_v12, %v179_v48 }
  0xa5   :  { %v168_v37 = vadd.f32 %v164_v2, %v144_v31  ;;  %v169_v38 = vadd.f32 %v165_v34, %v145_v32 }
  0xa6   :  { %v110_v40 = vpop.permute.xlu0 %109 }
  0xa7   :  { %v192_v41 = vadd.f32 %v188_v4, %v168_v37  ;;  %v193_v42 = vadd.f32 %v189_v35, %v169_v38  ;;  %v111_v43 = vsel %vm69_vm4, %v108_v61, %v110_v40  ;;  %v114_v24 = vsel %vm69_vm4, %v110_v40, %v104_v14 }
  0xa8   :  { %v115_v45 = vsel %vm400_vm5, %v338_v1, %v114_v24  ;;  %v118_v46 = vsel %vm393_vm3, %v345_v3, %v111_v43 }
  0xa9   :  { %196 = vst [vmem:[#allocation7 + $0x8] sm:$0xff] %v192_v41  ;;  %v147_v49 = vmul.f32 0.1, %v115_v45  ;;  %v150_v50 = vmul.f32 0.1, %v118_v46 }
  0xaa   :  { %197 = vst [vmem:[#allocation7 + $0x10] sm:$0xff] %v193_v42 }
  0xab   :  { %v163_v54 = vmul.f32 %v147_v49, %v135_v30  ;;  %v166_v1 = vmul.f32 %v150_v50, %v138_v28 }
  0xad   :  { %v167_v57 = vadd.f32 %v163_v54, %v143_v52  ;;  %v170_v3 = vadd.f32 %v166_v1, %v146_v53 }
  0xaf   :  { %v191_v33 = vadd.f32 %v187_v56, %v167_v57  ;;  %v194_v58 = vadd.f32 %v190_v55, %v170_v3 }
  0xb1   :  { %195 = vst [vmem:[#allocation7] sm:$0xff] %v191_v33 }
  0xb2   :  { %198 = vst [vmem:[#allocation7 + $0x18] sm:$0xff] %v194_v58 }
  0xb3   :  { %209 = dma.vmem_to_hbm [thread:$0]  %s205_s20, 512, %s207_s23, [#allocation4]  }
  0xb4   :  { %307 = dma.done.wait [#allocation4], 512  }
  0xb5   :  { %308 = vsyncadd [#allocation4], 4294966784 }
  0xb6   :  { %214 = vsyncpa [#allocation3], 1 }
  0xb7   :  { %215 = vsyncpa [#allocation6], 1 }
  0xb8   :  { %216 = vsyncpa [#allocation4], 1 }

</bundles_post_ra>
